<compile_context>
chip_gen: v7x
topology: tpu7x:2x2x1
jax: 0.10.0
libtpu: 0.0.40
codegen_flags: <defaults>
</compile_context>

<pallas_src>
import functools

import jax
import jax.numpy as jnp
from jax.experimental import pallas as pl
from jax.experimental.pallas import tpu as pltpu

_LANE = 128


# ---------------------------------------------------------------------------
# Sizing helpers
# ---------------------------------------------------------------------------

def _vmem_capacity_bytes():
    """Physical VMEM per TensorCore (generation-aware); conservative default."""
    try:
        info = pltpu.get_tpu_info()
        cap = getattr(info, "vmem_capacity_bytes", None)
        if cap:
            return int(cap)
    except Exception:
        pass
    return 64 << 20  # v7x per-TC size; safe lower bound for v5e/v6e (128 MiB)


def _pick_scale_chunk(hwp, tb, c, itemsize):
    """Largest lane-aligned chunk dividing hwp whose per-iteration slice stays
    within a handful of vregs (avoids spills under modest unrolling)."""
    for cand in (1024, 512, 256, 128):
        if hwp % cand == 0 and tb * c * cand * itemsize <= 32 * 1024:
            return cand
    return _LANE


# ---------------------------------------------------------------------------
# Single-pass fused kernel: pool -> MLP gate -> scale, one slab per grid step
# ---------------------------------------------------------------------------

def _ca_fused_kernel(x_ref, w1a_ref, w1b_ref, w2_ref, w3_ref, o_ref, *,
                     true_hw, scale_chunk, pool_unroll, scale_unroll):
    tb, c, hwp = x_ref.shape
    padded = hwp != true_hw

    # --- Streaming global avg/max pooling -----------------------------------
    # Elementwise (VPU) accumulation into lane-wide f32 accumulators; a single
    # cross-lane (XLU) reduce happens once after the loop.
    n_pool = hwp // _LANE
    n_clean = n_pool - 1 if padded else n_pool

    def pool_body(i, carry):
        s_acc, m_acc = carry
        start = pl.multiple_of(i * _LANE, _LANE)
        blk = x_ref[:, :, pl.ds(start, _LANE)].astype(jnp.float32)
        return s_acc + blk, jnp.maximum(m_acc, blk)

    init = (jnp.zeros((tb, c, _LANE), jnp.float32),
            jnp.full((tb, c, _LANE), -jnp.inf, jnp.float32))
    s_acc, m_acc = jax.lax.fori_loop(0, n_clean, pool_body, init,
                                     unroll=pool_unroll)

    if padded:
        # Last chunk holds the zero-padded tail: zeros are already neutral for
        # the sum; mask them to -inf for the max.
        start = n_clean * _LANE
        blk = x_ref[:, :, pl.ds(start, _LANE)].astype(jnp.float32)
        lane = jax.lax.broadcasted_iota(jnp.int32, (tb, c, _LANE), 2)
        valid = (start + lane) < true_hw
        s_acc = s_acc + blk
        m_acc = jnp.maximum(m_acc, jnp.where(valid, blk, -jnp.inf))

    avg = jnp.sum(s_acc, axis=-1) * (1.0 / true_hw)        # (tb, c) f32
    mx = jnp.max(m_acc, axis=-1)                           # (tb, c) f32

    # --- Tiny 3-layer MLP gate (weights f32-precast in the wrapper) ---------
    # cat([avg, max], dim=1) @ W1  ==  avg @ W1[:C] + max @ W1[C:]
    h = (jnp.dot(avg, w1a_ref[...], preferred_element_type=jnp.float32)
         + jnp.dot(mx, w1b_ref[...], preferred_element_type=jnp.float32))
    h = jnp.where(h > 0, h, 0.2 * h)                       # LeakyReLU(0.2)
    h = jnp.dot(h, w2_ref[...], preferred_element_type=jnp.float32)
    h = jnp.where(h > 0, h, 0.2 * h)
    g = jnp.dot(h, w3_ref[...], preferred_element_type=jnp.float32)
    gate = jax.nn.sigmoid(g)                               # (tb, c) f32

    # --- Channel-wise scaling: native dtype, gate broadcast hoisted ---------
    gate_b = jnp.broadcast_to(gate.astype(o_ref.dtype)[:, :, None],
                              (tb, c, scale_chunk))
    n_scale = hwp // scale_chunk

    def scale_body(i, carry):
        start = pl.multiple_of(i * scale_chunk, scale_chunk)
        o_ref[:, :, pl.ds(start, scale_chunk)] = (
            x_ref[:, :, pl.ds(start, scale_chunk)] * gate_b
        ).astype(o_ref.dtype)
        return carry

    jax.lax.fori_loop(0, n_scale, scale_body, 0, unroll=scale_unroll)


# ---------------------------------------------------------------------------
# Two-pass fallback kernels (slab does not fit VMEM)
# ---------------------------------------------------------------------------

def _ca_poolgate_kernel(x_ref, w1a_ref, w1b_ref, w2_ref, w3_ref, gate_ref,
                        s_sc, m_sc, *, true_hw, hw_tile):
    t = pl.program_id(1)

    @pl.when(t == 0)
    def _():
        s_sc[...] = jnp.zeros_like(s_sc)
        m_sc[...] = jnp.full_like(m_sc, -jnp.inf)

    blk = x_ref[...].astype(jnp.float32)                   # (1, c, hw_tile)
    lane = jax.lax.broadcasted_iota(jnp.int32, blk.shape, 2)
    valid = (t * hw_tile + lane) < true_hw
    s_sc[...] += jnp.sum(blk, axis=-1)                     # pad lanes are zero
    m_sc[...] = jnp.maximum(m_sc[...],
                            jnp.max(jnp.where(valid, blk, -jnp.inf), axis=-1))

    @pl.when(t == pl.num_programs(1) - 1)
    def _():
        avg = s_sc[...] * (1.0 / true_hw)
        h = (jnp.dot(avg, w1a_ref[...], preferred_element_type=jnp.float32)
             + jnp.dot(m_sc[...], w1b_ref[...], preferred_element_type=jnp.float32))
        h = jnp.where(h > 0, h, 0.2 * h)
        h = jnp.dot(h, w2_ref[...], preferred_element_type=jnp.float32)
        h = jnp.where(h > 0, h, 0.2 * h)
        g = jnp.dot(h, w3_ref[...], preferred_element_type=jnp.float32)
        gate_ref[...] = jax.nn.sigmoid(g)[:, :, None]


def _ca_apply_kernel(x_ref, gate_ref, o_ref):
    g = gate_ref[...].astype(o_ref.dtype)                  # (1, c, 1)
    o_ref[...] = (x_ref[...] * g).astype(o_ref.dtype)


# ---------------------------------------------------------------------------
# Wrapper
# ---------------------------------------------------------------------------

def channel_attention(x_nchw, w1, w2, w3, *, force_two_pass=False, hw_tile=None):
    """ChannelAttention forward.

    x_nchw: (B, C, H, W). w1: (2C, Cr), w2: (Cr, Cr), w3: (Cr, C), stored as
    (in, out) (transpose of PyTorch's nn.Linear weight) so the kernel
    right-multiplies. Output keeps the input dtype; pooling/MLP math is f32.
    """
    b, c, h, w = x_nchw.shape
    hw = h * w
    cr = w2.shape[0]
    itemsize = jnp.dtype(x_nchw.dtype).itemsize

    # Pre-cast the (tiny) weights once so the kernel never re-casts resident
    # tiles on every grid step.
    w1f = w1.astype(jnp.float32)
    w1a, w1b = w1f[:c, :], w1f[c:, :]
    w2f = w2.astype(jnp.float32)
    w3f = w3.astype(jnp.float32)
    weight_bytes = (2 * c * cr + cr * cr + cr * c) * 4

    # Lane-dense layout: zero-pad the spatial axis up to a multiple of 128.
    # The pad is masked out of the max in-kernel and the avg divides by the
    # true HW, so the gate is unaffected; every store is an unmasked vst.
    hwp = ((hw + _LANE - 1) // _LANE) * _LANE
    x_flat = x_nchw.reshape(b, c, hw)
    if hwp != hw:
        x_flat = jnp.pad(x_flat, ((0, 0), (0, 0), (0, hwp - hw)))

    vmem_budget = int(_vmem_capacity_bytes() * 0.75)   # generation-aware cap
    slab_bytes = c * hwp * itemsize
    headroom = 4 << 20

    def fused_need(tb):
        # double-buffered x + out slabs, double-buffered resident weights,
        # pooling accumulators, headroom.
        return (4 * tb * slab_bytes + 2 * weight_bytes
                + 2 * tb * c * _LANE * 4 + headroom)

    if not force_two_pass and fused_need(1) <= vmem_budget:
        # ---- Single-pass fused path ----------------------------------------
        # Batch-block small slabs: amortizes per-step overhead and turns the
        # M=1 MLP matmuls into M=TB, but only while >= 4 grid steps remain
        # (>= 2 per v7x TensorCore keeps the slab DMAs hidden) and the pooling
        # accumulators stay within the vreg file.
        tb = 1
        for cand in range(2, b + 1):
            if b % cand != 0:
                continue
            if cand * c > _LANE:            # accumulators would blow the vregs
                break
            if b // cand < 4:               # keep >= 2 steps per v7x TC
                break
            if fused_need(cand) <= vmem_budget:
                tb = cand

        n_pool_clean = hwp // _LANE - (1 if hwp != hw else 0)
        pool_unroll = max(1, min(4, n_pool_clean))
        scale_chunk = _pick_scale_chunk(hwp, tb, c, itemsize)
        n_scale = hwp // scale_chunk
        scale_unroll = max(1, min(
            4 if tb * c * scale_chunk * itemsize <= 16 * 1024 else 2, n_scale))

        kernel = functools.partial(
            _ca_fused_kernel, true_hw=hw, scale_chunk=scale_chunk,
            pool_unroll=pool_unroll, scale_unroll=scale_unroll)

        cost = pl.CostEstimate(
            flops=3 * b * c * hw + 2 * b * (2 * c * cr + cr * cr + cr * c),
            transcendentals=b * c,
            bytes_accessed=2 * b * c * hwp * itemsize + weight_bytes,
        )

        grid_spec = pltpu.PrefetchScalarGridSpec(
            num_scalar_prefetch=0,
            grid=(b // tb,),
            in_specs=[
                pl.BlockSpec((tb, c, hwp), lambda i: (i, 0, 0)),  # x slab
                pl.BlockSpec((c, cr), lambda i: (0, 0)),          # w1a (resident)
                pl.BlockSpec((c, cr), lambda i: (0, 0)),          # w1b (resident)
                pl.BlockSpec((cr, cr), lambda i: (0, 0)),         # w2  (resident)
                pl.BlockSpec((cr, c), lambda i: (0, 0)),          # w3  (resident)
            ],
            out_specs=pl.BlockSpec((tb, c, hwp), lambda i: (i, 0, 0)),
        )

        out = pl.pallas_call(
            kernel,
            out_shape=jax.ShapeDtypeStruct((b, c, hwp), x_flat.dtype),
            grid_spec=grid_spec,
            compiler_params=pltpu.CompilerParams(
                dimension_semantics=("parallel",),
                vmem_limit_bytes=min(max(fused_need(tb), 32 << 20), vmem_budget),
            ),
            cost_estimate=cost,
        )(x_flat, w1a, w1b, w2f, w3f)
    else:
        # ---- Two-pass fallback ---------------------------------------------
        # Pass 1: stream (1, C, tile) blocks, accumulate sum/max in VMEM
        # scratch, emit the sigmoid gate at the last tile. Pass 2: re-read x
        # and apply the gate. Handles slabs larger than the VMEM budget.
        if hw_tile is None:
            tile = _LANE
            cand = _LANE
            while cand <= hwp:
                if (hwp % cand == 0 and
                        4 * c * cand * itemsize + 2 * weight_bytes + headroom
                        <= vmem_budget):
                    tile = cand
                cand += _LANE
        else:
            assert hw_tile % _LANE == 0 and hwp % hw_tile == 0
            tile = hw_tile
        n_t = hwp // tile

        pool_kernel = functools.partial(_ca_poolgate_kernel,
                                        true_hw=hw, hw_tile=tile)
        gates = pl.pallas_call(
            pool_kernel,
            out_shape=jax.ShapeDtypeStruct((b, c, 1), jnp.float32),
            grid_spec=pltpu.PrefetchScalarGridSpec(
                num_scalar_prefetch=0,
                grid=(b, n_t),
                in_specs=[
                    pl.BlockSpec((1, c, tile), lambda i, t: (i, 0, t)),
                    pl.BlockSpec((c, cr), lambda i, t: (0, 0)),
                    pl.BlockSpec((c, cr), lambda i, t: (0, 0)),
                    pl.BlockSpec((cr, cr), lambda i, t: (0, 0)),
                    pl.BlockSpec((cr, c), lambda i, t: (0, 0)),
                ],
                out_specs=pl.BlockSpec((1, c, 1), lambda i, t: (i, 0, 0)),
                scratch_shapes=[pltpu.VMEM((1, c), jnp.float32),
                                pltpu.VMEM((1, c), jnp.float32)],
            ),
            compiler_params=pltpu.CompilerParams(
                dimension_semantics=("parallel", "arbitrary"),
                vmem_limit_bytes=min(
                    max(4 * c * tile * itemsize + 2 * weight_bytes + headroom,
                        32 << 20), vmem_budget),
            ),
        )(x_flat, w1a, w1b, w2f, w3f)

        out = pl.pallas_call(
            _ca_apply_kernel,
            out_shape=jax.ShapeDtypeStruct((b, c, hwp), x_flat.dtype),
            grid_spec=pltpu.PrefetchScalarGridSpec(
                num_scalar_prefetch=0,
                grid=(b, n_t),
                in_specs=[
                    pl.BlockSpec((1, c, tile), lambda i, t: (i, 0, t)),
                    pl.BlockSpec((1, c, 1), lambda i, t: (i, 0, 0)),
                ],
                out_specs=pl.BlockSpec((1, c, tile), lambda i, t: (i, 0, t)),
            ),
            compiler_params=pltpu.CompilerParams(
                dimension_semantics=("parallel", "parallel"),
                vmem_limit_bytes=min(
                    max(8 * c * tile * itemsize + headroom, 32 << 20),
                    vmem_budget),
            ),
        )(x_flat, gates)

    if hwp != hw:
        out = out[:, :, :hw]
    return out.reshape(b, c, h, w)


# ---------------------------------------------------------------------------
# Pure-JAX reference
# ---------------------------------------------------------------------------

def channel_attention_ref(x, w1, w2, w3):
    avg = jnp.mean(x, axis=(2, 3))
    mx = jnp.max(x, axis=(2, 3))
    o = jnp.concatenate([avg, mx], axis=1)
    o = o @ w1
    o = jnp.where(o > 0, o, 0.2 * o)
    o = o @ w2
    o = jnp.where(o > 0, o, 0.2 * o)
    o = jax.nn.sigmoid(o @ w3)
    return x * o[:, :, None, None]


if __name__ == "__main__":
    B, C, H, W = 2, 32, 16, 16
    REDUCTION = 8
    CR = C // REDUCTION

    key = jax.random.PRNGKey(0)
    kx, k1, k2, k3 = jax.random.split(key, 4)
    x = jax.random.normal(kx, (B, C, H, W), dtype=jnp.float32)
    # Deterministic synthetic weights (Linear has bias=False), stored (in, out).
    w1 = jax.random.normal(k1, (2 * C, CR), dtype=jnp.float32) * 0.1
    w2 = jax.random.normal(k2, (CR, CR), dtype=jnp.float32) * 0.1
    w3 = jax.random.normal(k3, (CR, C), dtype=jnp.float32) * 0.1

    # 1) Single-pass fused path.
    y = jax.block_until_ready(channel_attention(x, w1, w2, w3))
    y_ref = channel_attention_ref(x, w1, w2, w3)
    assert y.shape == (B, C, H, W) and y.dtype == x.dtype
    assert jnp.allclose(y, y_ref, atol=1e-5, rtol=1e-5), "fused path mismatch"

    # 2) Non-128-multiple spatial size (lane-dense padding + masked max path).
    x2 = jax.random.normal(kx, (B, C, 14, 14), dtype=jnp.float32)
    y2 = jax.block_until_ready(channel_attention(x2, w1, w2, w3))
    assert jnp.allclose(y2, channel_attention_ref(x2, w1, w2, w3),
                        atol=1e-5, rtol=1e-5), "padded path mismatch"

    # 3) Two-pass fallback (forced, small tile so the reduction spans >1 tile).
    y3 = jax.block_until_ready(
        channel_attention(x, w1, w2, w3, force_two_pass=True, hw_tile=128))
    assert jnp.allclose(y3, y_ref, atol=1e-5, rtol=1e-5), "two-pass mismatch"

    print("KERNEL_OK")
</pallas_src>

<mosaic_0001>
module attributes {stable_mosaic.version = 11 : i64} {
  func.func @_ca_fused_kernel(%arg0: i32, %arg1: memref<1x32x256xf32, #tpu.memory_space<vmem>>, %arg2: memref<32x4xf32, #tpu.memory_space<vmem>>, %arg3: memref<32x4xf32, #tpu.memory_space<vmem>>, %arg4: memref<4x4xf32, #tpu.memory_space<vmem>>, %arg5: memref<4x32xf32, #tpu.memory_space<vmem>>, %arg6: memref<1x32x256xf32, #tpu.memory_space<vmem>>) attributes {dimension_semantics = [#tpu.dimension_semantics<parallel>], iteration_bounds = array<i64: 2>, scalar_prefetch = 0 : i64, scratch_operands = 0 : i64, tpu.core_type = #tpu.core_type<tc>, window_params = [{transform_indices = @transform_0, window_bounds = array<i64: 1, 32, 256>}, {pipeline_mode = #tpu.pipeline_mode<synchronous>, transform_indices = @transform_1, window_bounds = array<i64: 32, 4>}, {pipeline_mode = #tpu.pipeline_mode<synchronous>, transform_indices = @transform_2, window_bounds = array<i64: 32, 4>}, {pipeline_mode = #tpu.pipeline_mode<synchronous>, transform_indices = @transform_3, window_bounds = array<i64: 4, 4>}, {pipeline_mode = #tpu.pipeline_mode<synchronous>, transform_indices = @transform_4, window_bounds = array<i64: 4, 32>}, {transform_indices = @transform_5, window_bounds = array<i64: 1, 32, 256>}]} {
    %cst = arith.constant 0.000000e+00 : f32
    %0 = vector.broadcast %cst : f32 to vector<1x32x128xf32>
    %cst_0 = arith.constant 0xFF800000 : f32
    %1 = vector.broadcast %cst_0 : f32 to vector<1x32x128xf32>
    %c0_i32 = arith.constant 0 : i32
    %c128_i32 = arith.constant 128 : i32
    %2 = arith.muli %c0_i32, %c128_i32 : i32
    %3 = tpu.assume_multiple %2, 128 : i32
    %c0 = arith.constant 0 : index
    %c0_1 = arith.constant 0 : index
    %4 = arith.index_cast %3 : i32 to index
    %5 = vector.load %arg1[%c0, %c0_1, %4] : memref<1x32x256xf32, #tpu.memory_space<vmem>>, vector<1x32x128xf32>
    %6 = arith.addf %0, %5 : vector<1x32x128xf32>
    %7 = arith.maximumf %1, %5 : vector<1x32x128xf32>
    %c1_i32 = arith.constant 1 : i32
    %c128_i32_2 = arith.constant 128 : i32
    %8 = arith.muli %c1_i32, %c128_i32_2 : i32
    %9 = tpu.assume_multiple %8, 128 : i32
    %c0_3 = arith.constant 0 : index
    %c0_4 = arith.constant 0 : index
    %10 = arith.index_cast %9 : i32 to index
    %11 = vector.load %arg1[%c0_3, %c0_4, %10] : memref<1x32x256xf32, #tpu.memory_space<vmem>>, vector<1x32x128xf32>
    %12 = arith.addf %6, %11 : vector<1x32x128xf32>
    %13 = arith.maximumf %7, %11 : vector<1x32x128xf32>
    %c2_i32 = arith.constant 2 : i32
    %cst_5 = arith.constant dense<0.000000e+00> : vector<1x32xf32>
    %14 = vector.multi_reduction <add>, %12, %cst_5 [2] : vector<1x32x128xf32> to vector<1x32xf32>
    %cst_6 = arith.constant 3.906250e-03 : f32
    %15 = vector.broadcast %cst_6 : f32 to vector<1x32xf32>
    %16 = arith.mulf %14, %15 : vector<1x32xf32>
    %cst_7 = arith.constant dense<0xFF800000> : vector<1x32xf32>
    %17 = vector.multi_reduction <maximumf>, %13, %cst_7 [2] : vector<1x32x128xf32> to vector<1x32xf32>
    %c0_8 = arith.constant 0 : index
    %c0_9 = arith.constant 0 : index
    %18 = vector.load %arg2[%c0_8, %c0_9] : memref<32x4xf32, #tpu.memory_space<vmem>>, vector<32x4xf32>
    %cst_10 = arith.constant dense<0.000000e+00> : vector<1x4xf32>
    %19 = tpu.matmul %16, %18, %cst_10 {dimension_numbers = #tpu.dot_dimension_numbers<[1], [0], [0], [1], [0, 0, 1, 1], [], []>} : vector<1x32xf32>, vector<32x4xf32>, vector<1x4xf32> -> vector<1x4xf32>
    %c0_11 = arith.constant 0 : index
    %c0_12 = arith.constant 0 : index
    %20 = vector.load %arg3[%c0_11, %c0_12] : memref<32x4xf32, #tpu.memory_space<vmem>>, vector<32x4xf32>
    %cst_13 = arith.constant dense<0.000000e+00> : vector<1x4xf32>
    %21 = tpu.matmul %17, %20, %cst_13 {dimension_numbers = #tpu.dot_dimension_numbers<[1], [0], [0], [1], [0, 0, 1, 1], [], []>} : vector<1x32xf32>, vector<32x4xf32>, vector<1x4xf32> -> vector<1x4xf32>
    %22 = arith.addf %19, %21 : vector<1x4xf32>
    %cst_14 = arith.constant 0.000000e+00 : f32
    %23 = vector.broadcast %cst_14 : f32 to vector<1x4xf32>
    %24 = arith.cmpf ogt, %22, %23 : vector<1x4xf32>
    %cst_15 = arith.constant 2.000000e-01 : f32
    %25 = vector.broadcast %cst_15 : f32 to vector<1x4xf32>
    %26 = arith.mulf %25, %22 : vector<1x4xf32>
    %27 = arith.select %24, %22, %26 : vector<1x4xi1>, vector<1x4xf32>
    %c0_16 = arith.constant 0 : index
    %c0_17 = arith.constant 0 : index
    %28 = vector.load %arg4[%c0_16, %c0_17] : memref<4x4xf32, #tpu.memory_space<vmem>>, vector<4x4xf32>
    %cst_18 = arith.constant dense<0.000000e+00> : vector<1x4xf32>
    %29 = tpu.matmul %27, %28, %cst_18 {dimension_numbers = #tpu.dot_dimension_numbers<[1], [0], [0], [1], [0, 0, 1, 1], [], []>} : vector<1x4xf32>, vector<4x4xf32>, vector<1x4xf32> -> vector<1x4xf32>
    %cst_19 = arith.constant 0.000000e+00 : f32
    %30 = vector.broadcast %cst_19 : f32 to vector<1x4xf32>
    %31 = arith.cmpf ogt, %29, %30 : vector<1x4xf32>
    %cst_20 = arith.constant 2.000000e-01 : f32
    %32 = vector.broadcast %cst_20 : f32 to vector<1x4xf32>
    %33 = arith.mulf %32, %29 : vector<1x4xf32>
    %34 = arith.select %31, %29, %33 : vector<1x4xi1>, vector<1x4xf32>
    %c0_21 = arith.constant 0 : index
    %c0_22 = arith.constant 0 : index
    %35 = vector.load %arg5[%c0_21, %c0_22] : memref<4x32xf32, #tpu.memory_space<vmem>>, vector<4x32xf32>
    %cst_23 = arith.constant dense<0.000000e+00> : vector<1x32xf32>
    %36 = tpu.matmul %34, %35, %cst_23 {dimension_numbers = #tpu.dot_dimension_numbers<[1], [0], [0], [1], [0, 0, 1, 1], [], []>} : vector<1x4xf32>, vector<4x32xf32>, vector<1x32xf32> -> vector<1x32xf32>
    %37 = arith.negf %36 : vector<1x32xf32>
    %38 = math.exp %37 : vector<1x32xf32>
    %cst_24 = arith.constant 1.000000e+00 : f32
    %39 = vector.broadcast %cst_24 : f32 to vector<1x32xf32>
    %40 = arith.addf %39, %38 : vector<1x32xf32>
    %41 = arith.divf %39, %40 : vector<1x32xf32>
    %42 = vector.shape_cast %41 : vector<1x32xf32> to vector<1x32x1xf32>
    %43 = vector.shape_cast %42 : vector<1x32x1xf32> to vector<1x32x1xf32>
    %44 = vector.broadcast %43 : vector<1x32x1xf32> to vector<1x32x256xf32>
    %c0_i32_25 = arith.constant 0 : i32
    %c256_i32 = arith.constant 256 : i32
    %45 = arith.muli %c0_i32_25, %c256_i32 : i32
    %46 = tpu.assume_multiple %45, 256 : i32
    %c0_26 = arith.constant 0 : index
    %c0_27 = arith.constant 0 : index
    %47 = arith.index_cast %46 : i32 to index
    %48 = vector.load %arg1[%c0_26, %c0_27, %47] : memref<1x32x256xf32, #tpu.memory_space<vmem>>, vector<1x32x256xf32>
    %49 = arith.mulf %48, %44 : vector<1x32x256xf32>
    %c0_28 = arith.constant 0 : index
    %c0_29 = arith.constant 0 : index
    %50 = arith.index_cast %46 : i32 to index
    %51 = vector.load %arg6[%c0_28, %c0_29, %50] : memref<1x32x256xf32, #tpu.memory_space<vmem>>, vector<1x32x256xf32>
    tpu.vector_store %arg6[%c0_28, %c0_29, %50], %49 {strides = array<i32>} : memref<1x32x256xf32, #tpu.memory_space<vmem>>, vector<1x32x256xf32>,
    %c1_i32_30 = arith.constant 1 : i32
    return
  }
  func.func @transform_0(%arg0: i32) -> (i32, i32, i32) {
    %c0_i32 = arith.constant 0 : i32
    %c0_i32_0 = arith.constant 0 : i32
    %c0_i32_1 = arith.constant 0 : i32
    return %arg0, %c0_i32, %c0_i32_0 : i32, i32, i32
  }
  func.func @transform_1(%arg0: i32) -> (i32, i32) {
    %c0_i32 = arith.constant 0 : i32
    %c0_i32_0 = arith.constant 0 : i32
    %c0_i32_1 = arith.constant 0 : i32
    return %c0_i32, %c0_i32_0 : i32, i32
  }
  func.func @transform_2(%arg0: i32) -> (i32, i32) {
    %c0_i32 = arith.constant 0 : i32
    %c0_i32_0 = arith.constant 0 : i32
    %c0_i32_1 = arith.constant 0 : i32
    return %c0_i32, %c0_i32_0 : i32, i32
  }
  func.func @transform_3(%arg0: i32) -> (i32, i32) {
    %c0_i32 = arith.constant 0 : i32
    %c0_i32_0 = arith.constant 0 : i32
    %c0_i32_1 = arith.constant 0 : i32
    return %c0_i32, %c0_i32_0 : i32, i32
  }
  func.func @transform_4(%arg0: i32) -> (i32, i32) {
    %c0_i32 = arith.constant 0 : i32
    %c0_i32_0 = arith.constant 0 : i32
    %c0_i32_1 = arith.constant 0 : i32
    return %c0_i32, %c0_i32_0 : i32, i32
  }
  func.func @transform_5(%arg0: i32) -> (i32, i32, i32) {
    %c0_i32 = arith.constant 0 : i32
    %c0_i32_0 = arith.constant 0 : i32
    %c0_i32_1 = arith.constant 0 : i32
    return %arg0, %c0_i32, %c0_i32_0 : i32, i32, i32
  }
}

</mosaic_0001>

<bundles_post_ra>
// kernel: tpu_custom_call.1
= control target key start
LH: loop header
LB: loop body
LE: loop exit
PB: predicated region body
PF: predicated region fallthrough
CT: control target
= control target key end

     0   :  { %10 = vsyncpa [#allocation3], 0  ;;  %s1331_s0 = inlined_call_operand.hbm [shape: f32[2,32,256], index: 0, kind: input, shape index: {}]   ;;  %s1332_s1 = inlined_call_operand.vmem [shape: f32[32,4], index: 1, kind: input, shape index: {}]   ;;  %s1333_s2 = inlined_call_operand.vmem [shape: f32[32,4], index: 2, kind: input, shape index: {}]   ;;  %s1334_s3 = inlined_call_operand.vmem [shape: f32[4,4], index: 3, kind: input, shape index: {}]   ;;  %s1335_s4 = inlined_call_operand.vmem [shape: f32[4,32], index: 4, kind: input, shape index: {}]   ;;  %s1336_s5 = inlined_call_operand.hbm [shape: f32[2,32,256], index: 5, kind: output, shape index: {}]  }
   0x1   :  { %12 = vsyncpa [#allocation3 + $0x1], 0 }
   0x2   :  { %13 = vsyncpa [#allocation4], 0 }
   0x3   :  { %15 = vsyncpa [#allocation4 + $0x1], 0  ;;  %s1070_s18 = smov 0   ;;  %s1072_s19 = smov 0  }
   0x4   :  { %s1074_s20 = smov 0   ;;  %s1076_s21 = smov 0  }
   0x5 LB: > { %s1091_s22 = sadd.s32 4294967295, %s1029_s21   ;;  %s789_s23 = sadd.s32 4294967294, %s1029_s21   ;;  %s1029_s21 = sphi %s1076_s21, %s1349_s21   ;;  %s1025_s20 = sphi %s1074_s20, %s1348_s20   ;;  %s1021_s19 = sphi %s1072_s19, %s1347_s19   ;;  %s1017_s18 = sphi %s1070_s18, %s1346_s18  }
   0x6   : > { %s1095_s24 = sadd.s32 1, %s1029_s21   ;;  %s28_s25 = sadd.s32 1, %s1025_s20 }
   0x7   : > { %s25_s26 = ssub.s32 %s1029_s21, %s1095_s24  ;;  %p35_p0 = scmp.ne.s32.totalorder %s1025_s20, %s1021_s19 }
   0x8   : > { %p26_p1 = scmp.eq.s32.totalorder %s25_s26, 0  ;;  %p36_p2 = scmp.eq.s32.totalorder %s1029_s21, 0 }
   0x9   : > { %p41_p3 = scmp.ne.s32.totalorder %s1021_s19, %s1017_s18  ;;  %p42_p4 = scmp.eq.s32.totalorder %s1091_s22, 0 }
   0xa   : > { %s1107_s27 = scalar_select %p26_p1, %s1025_s20, %s28_s25  }
   0xb   : > { %p1109_p5 = por %p36_p2, %p35_p0  ;;  %p1113_p6 = por %p42_p4, %p41_p3 }
   0xc   : > { %p149_p7 = scmp.eq.s32.totalorder %s1091_s22, 1  ;;  %p155_p8 = scmp.eq.s32.totalorder %s789_s23, 1 }
   0xd   : > { %p888_p10 = scmp.lt.s32.totalorder %s1029_s21, 2  ;;  %s187_s7 = sand.u32 1, %s1025_s20  }
   0xe   : > { %p1120_p11 = por %p149_p7, %p35_p0  ;;  %p1124_p12 = por %p155_p8, %p41_p3 }
   0xf   : > { %s814_s8 = sshll.u32 %s1029_s21, 10  ;;  %s792_s9 = sshll.u32 %s187_s7, 6 }
  0x10   : > { %s1340_s30 = scalar_select %p1120_p11, 1, 0 }
  0x11   : > { %s1341_s6 = scalar_select %p1124_p12, 1, 0 }
  0x12   : > { %s1133_s12 = scalar_lea.hbm %s1331_s0, %s814_s8  ;;  %s191_s13 = scalar_lea.vmem [#allocation2], %s792_s9 }
  0x13   : > { %s198_s14 = sshll.u32 %s191_s13, 4  ;;  %p1137_p13 = pnand %p888_p10, %p1109_p5  ;;  %s1141_s14 = int_to_ptr.vmem [resolvable:$true] %s198_s14 }
  0x14   : > { %s1143_s16 = scalar_lea.sflag [#allocation3], %s187_s7  ;;  %s933_s17 = scalar_lea.hbm %s1133_s12, 1024 }
  0x15   : > { %p934_p0 = scmp.ne.s32.totalorder %s1133_s12, %s933_s17  ;;  %p935_p1 = pneg %p1137_p13 }
  0x16   : > { %s938_s26 = scalar_lea.hbm %s1331_s0, 2048  ;;  %p939_p4 = scmp.lt.u32.totalorder %s1133_s12, %s1331_s0 }
  0x17   : > { %p936_p2 = pnand %p935_p1, %p934_p0  ;;  %p940_p5 = scmp.lt.u32.totalorder %s938_s26, %s933_s17 }
  0x18   : > { %p942_p8 = scmp.lt.u32.totalorder %s933_s17, %s1133_s12 }
  0x19   : > { %p937_p3 = pneg %p936_p2  ;;  %p941_p7 = por %p940_p5, %p939_p4 }
  0x1b   : > { %p943_p10 = por %p942_p8, %p941_p7 }
  0x1d   : > { %p944_p9 = pnand %p943_p10, %p937_p3 }
  0x1f   : > { %947 = shalt.err (!%p944_p9)
}
  0x20   : > { %s948_s7 = scalar_lea.vmem %s1141_s14, 1024  ;;  %s1031_s9 = smov [#allocation2]  }
  0x21   : > { %p949_p0 = scmp.ne.s32.totalorder %s1141_s14, %s948_s7  ;;  %s953_s10 = sshll.u32 %s1031_s9, 4  ;;  %s954_s10 = int_to_ptr.vmem [resolvable:$false] %s953_s10 }
  0x22   : > { %s955_s11 = scalar_lea.vmem %s954_s10, 2048  ;;  %p956_p11 = scmp.lt.s32.totalorder %s1141_s14, %s954_s10 }
  0x23   : > { %p951_p2 = pnand %p949_p0, %p935_p1  ;;  %p957_p4 = scmp.lt.s32.totalorder %s955_s11, %s948_s7 }
  0x25   : > { %p952_p12 = pneg %p951_p2  ;;  %p958_p5 = por %p957_p4, %p956_p11 }
  0x27   : > { %p959_p7 = pnand %p958_p5, %p952_p12 }
  0x29   : > { %962 = shalt.err (!%p959_p7)
}
  0x2a   : > { %s1032_s13 = smov 256   ;;  %s1033_s17 = smov 16  }
  0x2b   : > { %883 = dma.hbm_to_vmem [thread:$0]  (!%p1137_p13), %s1133_s12, 1024, %s1141_s14, %s1143_s16, %s1032_s13, %s1032_s13, %s1033_s17  }
  0x2c   : > { %p795_p9 = scmp.ge.s32.totalorder %s1029_s21, 1  ;;  %p206_p1 = scmp.lt.s32.totalorder %s1029_s21, 3 }
  0x2e   : > { %p207_p3 = pnand %p795_p9, %p206_p1 }
  0x2f   : > { %s1174_s23 = sand.u32 (!%p207_p3), 1, %s1021_s19  }
  0x30   : > { %210 = sbr.rel (%p207_p3) target bundleno = 1030 (0x406), region = 40  ;;  %s796_s25 = sshll.u32 (!%p207_p3), %s1174_s23, 6 }
  0x31   : > { %s213_s26 = scalar_lea.sflag (!%p207_p3), [#allocation3], %s1174_s23  ;;  %s216_s28 = scalar_lea.vmem (!%p207_p3), [#allocation2], %s796_s25 }
  0x37   : > { %1008 = dma.done.wait (%p1113_p6), %s213_s26, 1024  }
  0x38   : > { %1010 = vsyncadd (%p1113_p6), %s213_s26, 4294966272  ;;  %v1184_v0 = vld [vmem:[%s216_s28 + $0x20] sm:$0xff]  ;;  %v1186_v1 = vld [vmem:[%s216_s28 + $0x28] sm:$0xff]  ;;  %v1034_v19 = vmov 0.0|0.0   ;;  %vm1035_vm0 = vmmov 0   ;;  %v1036_v23 = vmov 0.0   ;;  %v296_v24 = vlaneseq }
  0x39   : > { %v1188_v2 = vld [vmem:[%s216_s28] sm:$0xff]  ;;  %v262_v3 = vmax.f32 %v1184_v0, %v1186_v1  ;;  %v1192_v4 = vld [vmem:[%s216_s28 + $0x8] sm:$0xff]  ;;  %v1194_v5 = vld [vmem:[%s216_s28 + $0x30] sm:$0xff]  ;;  %v258_v15 = vadd.f32 %v1186_v1, %v1184_v0  ;;  %862 = vmatprep.subr.bf16.mxu0 %v1034_v19  ;;  %838 = vmatprep.mubr.msk.f32.mxu0 %vm1035_vm0, %v1036_v23  ;;  %vm307_vm1 = vcmask 130112   ;;  %vm314_vm2 = vcmask 195712   ;;  %s242_s7 = scalar_lea.vmem [#allocation5], %s796_s25 }
  0x3a   : > { %v1196_v6 = vld [vmem:[%s216_s28 + $0x38] sm:$0xff]  ;;  %v260_v7 = vmax.f32 %v1188_v2, %v1192_v4  ;;  %v1200_v8 = vld [vmem:[%s216_s28 + $0x10] sm:$0xff]  ;;  %v256_v13 = vadd.f32 %v1192_v4, %v1188_v2  ;;  %v288_v16 = vld [vmem:[%s1333_s2] sm:$0xff]  ;;  %852 = vmatprep.subr.mxu1 %v1036_v23  ;;  %854 = vmatprep.mubr.msk.f32.mxu1 %vm1035_vm0, %v1036_v23  ;;  %v297_v25 = vand.u32 127, %v296_v24  ;;  %v1233_v26 = vshrl.u32 %v296_v24, 7  ;;  %s716_s9 = sshll.u32 %s242_s7, 4  ;;  %s1280_s9 = int_to_ptr.vmem [resolvable:$true] %s716_s9 }
  0x3b   : > { %v1202_v9 = vld [vmem:[%s216_s28 + $0x18] sm:$0xff]  ;;  %280 = vmax.xlane.f32.xlu1 %v262_v3  ;;  %v263_v10 = vmax.f32 %v1194_v5, %v1196_v6  ;;  %v259_v14 = vadd.f32 %v1196_v6, %v1194_v5  ;;  %v289_v17 = vld [vmem:[%s1333_s2 + $0x8] sm:$0xff]  ;;  %v290_v20 = vld [vmem:[%s1333_s2 + $0x10] sm:$0xff]  ;;  %vm321_vm3 = vcmask 261312   ;;  %vm323_vm4 = vcmask 261120   ;;  %s815_s10 = sshll.u32 %s1091_s22, 10 }
  0x3c   : > { %276 = vmax.xlane.f32.xlu0 %v260_v7  ;;  %v261_v11 = vmax.f32 %v1200_v8, %v1202_v9  ;;  %v257_v12 = vadd.f32 %v1202_v9, %v1200_v8  ;;  %v863_v18 = vpack.c.bf16 %v289_v17, %v288_v16  ;;  %v291_v21 = vld [vmem:[%s1333_s2 + $0x18] sm:$0xff]  ;;  %v316_v27 = vadd.s32 4294967272, %v297_v25  ;;  %v284_v38 = vld [vmem:[%s1332_s1] sm:$0xff]  ;;  %v285_v39 = vld [vmem:[%s1332_s1 + $0x8] sm:$0xff]  ;;  %s1285_s13 = scalar_lea.hbm %s1336_s5, %s815_s10  ;;  %s703_s22 = scalar_lea.sflag [#allocation4], %s1174_s23 }
  0x3d   : > { %v866_v22 = vpack.c.bf16 %v291_v21, %v290_v20  ;;  %v302_v28 = vadd.s32 4294967288, %v297_v25  ;;  %v309_v29 = vadd.s32 4294967280, %v297_v25  ;;  %v300_v32 = vsub.s32 %v297_v25, %v1233_v26  ;;  %v286_v50 = vld [vmem:[%s1332_s1 + $0x10] sm:$0xff]  ;;  %v287_v51 = vld [vmem:[%s1332_s1 + $0x18] sm:$0xff]  ;;  %s963_s17 = scalar_lea.vmem %s1280_s9, 1024  ;;  %p1343_p11 = scmp.ne.s32.totalorder %s1340_s30, 0 }
  0x3e   : > { %864 = vmatpush3.bf16.msra.mxu0 %v863_v18  ;;  %v319_v33 = vsub.s32 %v316_v27, %v1233_v26  ;;  %v869_v46 = vpack.c.bf16 %v285_v39, %v284_v38  ;;  %v872_v55 = vpack.c.bf16 %v287_v51, %v286_v50  ;;  %vm499_vm5 = vcmask 1043456   ;;  %p964_p6 = scmp.ne.s32.totalorder %s1280_s9, %s963_s17  ;;  %s1037_s26 = smov [#allocation5]  }
  0x3f   : > { %282 = vmax.xlane.f32.xlu1 %v263_v10  ;;  %865 = vmatprep.subr.bf16.mxu0 %v1034_v19  ;;  %v305_v34 = vsub.s32 %v302_v28, %v1233_v26  ;;  %v312_v35 = vsub.s32 %v309_v29, %v1233_v26  ;;  %v494_v10 = vld [vmem:[%s1334_s3] sm:$0xf]  ;;  %vm495_vm7 = vcmask 31744   ;;  %s967_s28 = sshll.u32 %s1037_s26, 4  ;;  %s968_s28 = int_to_ptr.vmem [resolvable:$false] %s967_s28 }
  0x40   : > { %278 = vmax.xlane.f32.xlu0 %v261_v11  ;;  %853 = vmatpush3.msk.msra.mxu1 %vm499_vm5, %v494_v10  ;;  %p965_p12 = pnand %p964_p6, %p1343_p11  ;;  %s969_s29 = scalar_lea.vmem %s968_s28, 2048 }
  0x41   : > { %857 = vmatprep.subr.mxu1 %v1036_v23  ;;  %p970_p8 = scmp.lt.s32.totalorder %s1280_s9, %s968_s28  ;;  %p971_p10 = scmp.lt.s32.totalorder %s969_s29, %s963_s17 }
  0x42   : > { %867 = vmatpush3.bf16.msra.mxu0 %v866_v22  ;;  %p966_p13 = pneg %p965_p12 }
  0x43   : > { %266 = vadd.xlane.f32.xlu1 %v257_v12  ;;  %868 = vmatprep.subr.bf16.mxu0 %v1034_v19  ;;  %p972_p0 = por %p971_p10, %p970_p8 }
  0x44   : > { %264 = vadd.xlane.f32.xlu0 %v256_v13 }
  0x45   : > { %p973_p2 = pnand %p972_p0, %p966_p13 }
  0x47   : > { %270 = vadd.xlane.f32.xlu1 %v259_v14 }
  0x48   : > { %268 = vadd.xlane.f32.xlu0 %v258_v15  ;;  %v576_v15 = vld [vmem:[%s1335_s4] sm:$0xf] }
  0xc8   : > { %v281_v30 = vpop.xlane.xlu1 %280 }
  0xc9   : > { %v277_v31 = vpop.xlane.xlu0 %276  ;;  %v313_v43 = vrot.slane %v281_v30, %v312_v35 }
  0xca   : > { %v301_v40 = vrot.slane %v277_v31, %v300_v32 }
  0xcc   : > { %v283_v36 = vpop.xlane.xlu1 %282 }
  0xcd   : > { %v279_v37 = vpop.xlane.xlu0 %278  ;;  %v320_v41 = vrot.slane %v283_v36, %v319_v33 }
  0xce   : > { %v306_v42 = vrot.slane %v279_v37, %v305_v34 }
  0xd0   : > { %v308_v44 = vsel %vm307_vm1, %v306_v42, %v301_v40  ;;  %v267_v45 = vpop.xlane.xlu1 %266 }
  0xd1   : > { %v273_v47 = vmul.f32 0.00390625, %v267_v45  ;;  %v265_v48 = vpop.xlane.xlu0 %264  ;;  %v315_v49 = vsel %vm314_vm2, %v313_v43, %v308_v44 }
  0xd2   : > { %v272_v52 = vmul.f32 0.00390625, %v265_v48  ;;  %v322_v53 = vsel %vm321_vm3, %v320_v41, %v315_v49 }
  0xd3   : > { %839 = vmatmul.mubr.msk.f32.vlgmr.msra.gmra.mrb[0].mxu0 %vm323_vm4, %v322_v53  ;;  %v407_v56 = vrot.slane %v273_v47, %v305_v34 }
  0xd4   : > { %870 = vmatpush3.bf16.msra.mxu0 %v869_v46  ;;  %v271_v54 = vpop.xlane.xlu1 %270  ;;  %849 = vmatprep.mubr.msk.f32.mxu0 %vm1035_vm0, %v1036_v23  ;;  %v403_v57 = vrot.slane %v272_v52, %v300_v32 }
  0xd5   : > { %v269_v58 = vpop.xlane.xlu0 %268  ;;  %v275_v59 = vmul.f32 0.00390625, %v271_v54  ;;  %871 = vmatprep.subr.bf16.mxu0 %v1034_v19 }
  0xd6   : > { %v274_v60 = vmul.f32 0.00390625, %v269_v58  ;;  %v408_v63 = vsel %vm307_vm1, %v407_v56, %v403_v57 }
  0xd7   : > { %v417_v61 = vrot.slane %v275_v59, %v319_v33 }
  0xd8   : > { %v412_v62 = vrot.slane %v274_v60, %v312_v35  ;;  %873 = vmatpush3.bf16.msra.mxu0 %v872_v55 }
  0xda   : > { %v413_v3 = vsel %vm314_vm2, %v412_v62, %v408_v63 }
  0xdb   : > { %v418_v7 = vsel %vm321_vm3, %v417_v61, %v413_v3 }
  0xdc   : > { %850 = vmatmul.mubr.msk.f32.vlgmr.msra.gmra.mrb[0].mxu0 %vm323_vm4, %v418_v7 }
 0x1af   : > { %v487_v11 = vpop.f32.mrb[0].mxu0 }
 0x1b0   : > { %vm491_vm6 = vcmp.gt.f32.partialorder %v487_v11, 0.0  ;;  %v492_v12 = vmul.f32 0.2, %v487_v11  ;;  %v851_v13 = vpop.f32.mrb[1].mxu0 }
 0x1b2   : > { %v493_v14 = vsel %vm491_vm6, %v487_v11, %v492_v12 }
 0x1b3   : > { %855 = vmatmul.mubr.msk.f32.vlgmr.msra.gmra.mrb[0].mxu1 %vm495_vm7, %v493_v14 }
 0x1b4   : > { %859 = vmatprep.mubr.msk.f32.mxu1 %vm1035_vm0, %v1036_v23  ;;  %858 = vmatpush3.msk.msra.mxu1 %vm499_vm5, %v576_v15  ;;  %v661_v23 = vsub.s32 0, %v1233_v26 }
 0x286   : > { %v569_v16 = vpop.f32.mrb[0].mxu1 }
 0x287   : > { %vm573_vm8 = vcmp.gt.f32.partialorder %v569_v16, 0.0  ;;  %v574_v17 = vmul.f32 0.2, %v569_v16  ;;  %v856_v18 = vpop.f32.mrb[1].mxu1 }
 0x289   : > { %v575_v19 = vsel %vm573_vm8, %v569_v16, %v574_v17 }
 0x28a   : > { %860 = vmatmul.mubr.msk.f32.vlgmr.msra.gmra.mrb[2].mxu1 %vm495_vm7, %v575_v19 }
 0x35d   : > { %v649_v20 = vpop.f32.mrb[2].mxu1 }
 0x35e   : > { %v808_v21 = vmul.f32 -1.442695, %v649_v20  ;;  %v861_v22 = vpop.f32.mrb[3].mxu1 }
 0x360   : > { %929 = vpow2.f32 %v808_v21 }
 0x36a   : > { %v930_v24 = vpop.eup %929 }
 0x36b   : > { %v656_v25 = vadd.f32 1.0, %v930_v24 }
 0x36d   : > { %931 = vrcp.f32 %v656_v25 }
 0x377   : > { %v932_v27 = vpop.eup %931 }
 0x378   : > { %v662_v28 = vrot.slane %v932_v27, %v661_v23 }
 0x37a   : > { %668 = vbcast.lane.b32.xlu1 %v662_v28, 264  ;;  %664 = vbcast.lane.b32.xlu0 %v662_v28, 256 }
 0x37e   : > { %672 = vbcast.lane.b32.xlu1 %v662_v28, 272 }
 0x382   : > { %676 = vbcast.lane.b32.xlu1 %v662_v28, 280 }
 0x3ec   : > { %v669_v29 = vpop.permute.xlu1 %668  ;;  %v665_v30 = vpop.permute.xlu0 %664 }
 0x3ed   : > { %v688_v31 = vmul.f32 %v669_v29, %v1200_v8  ;;  %v689_v32 = vmul.f32 %v1202_v9, %v669_v29  ;;  %v686_v33 = vmul.f32 %v665_v30, %v1188_v2  ;;  %v687_v34 = vmul.f32 %v1192_v4, %v665_v30 }
 0x3ef   : > { %696 = vst [vmem:[%s242_s7 + $0x10] sm:$0xff] %v688_v31  ;;  %697 = vst [vmem:[%s242_s7 + $0x18] sm:$0xff] %v689_v32 }
 0x3f0   : > { %694 = vst [vmem:[%s242_s7] sm:$0xff] %v686_v33  ;;  %695 = vst [vmem:[%s242_s7 + $0x8] sm:$0xff] %v687_v34  ;;  %v673_v26 = vpop.permute.xlu1 %672 }
 0x3f1   : > { %v690_v35 = vmul.f32 %v673_v26, %v1184_v0  ;;  %v691_v8 = vmul.f32 %v1186_v1, %v673_v26 }
 0x3f3   : > { %698 = vst [vmem:[%s242_s7 + $0x20] sm:$0xff] %v690_v35  ;;  %699 = vst [vmem:[%s242_s7 + $0x28] sm:$0xff] %v691_v8 }
 0x3f4   : > { %v677_v2 = vpop.permute.xlu1 %676 }
 0x3f5   : > { %v692_v4 = vmul.f32 %v677_v2, %v1194_v5  ;;  %v693_v0 = vmul.f32 %v1196_v6, %v677_v2 }
 0x3f7   : > { %700 = vst [vmem:[%s242_s7 + $0x30] sm:$0xff] %v692_v4  ;;  %701 = vst [vmem:[%s242_s7 + $0x38] sm:$0xff] %v693_v0 }
 0x3f8   : > { %976 = shalt.err (!%p973_p2)
}
 0x3f9   : > { %s977_s12 = scalar_lea.hbm %s1285_s13, 1024  ;;  %s981_s16 = scalar_lea.hbm %s1336_s5, 2048 }
 0x3fa   : > { %p978_p4 = scmp.ne.s32.totalorder %s1285_s13, %s977_s12  ;;  %p982_p9 = scmp.lt.u32.totalorder %s1285_s13, %s1336_s5 }
 0x3fb   : > { %p983_p1 = scmp.lt.u32.totalorder %s981_s16, %s977_s12  ;;  %p985_p6 = scmp.lt.u32.totalorder %s977_s12, %s1285_s13 }
 0x3fc   : > { %p979_p5 = pnand %p978_p4, %p1343_p11 }
 0x3fd   : > { %p984_p3 = por %p983_p1, %p982_p9 }
 0x3fe   : > { %p980_p7 = pneg %p979_p5 }
 0x3ff   : > { %p986_p12 = por %p985_p6, %p984_p3 }
 0x401   : > { %p987_p13 = pnand %p986_p12, %p980_p7 }
 0x403   : > { %990 = shalt.err (!%p987_p13)
}
 0x404   : > { %s1038_s10 = smov 256   ;;  %s1039_s25 = smov 16  }
 0x405   : > { %878 = dma.vmem_to_hbm [thread:$0]  (%p1343_p11), %s1280_s9, 1024, %s1285_s13, %s703_s22, %s1038_s10, %s1038_s10, %s1039_s25  }
 0x406 PF: > { %s731_s11 = sand.u32 1, %s1017_s18   ;;  %p1344_p8 = scmp.ne.s32.totalorder %s1341_s6, 0 }
 0x407   : > { %p1345_p10 = scmp.ge.s32.totalorder %s1029_s21, 2  ;;  %s732_s17 = scalar_lea.sflag [#allocation4], %s731_s11 }
 0x409   : > { %p885_p0 = pnand %p1345_p10, %p1344_p8 }
 0x40b   : > { %1012 = dma.done.wait (!%p885_p0), %s732_s17, 1024  }
 0x40c   : > { %1014 = vsyncadd (!%p885_p0), %s732_s17, 4294966272  ;;  %p18_p2 = scmp.ge.s32.totalorder %s1095_s24, 4   ;;  %s1346_s18 = smov %s1021_s19 }
 0x40d   : > { %s1347_s19 = smov %s1025_s20  ;;  %s1348_s20 = smov %s1107_s27 }
 0x40e   : > { %s1349_s21 = smov %s1095_s24  ;;  %20 = sbr.rel (!%p18_p2) target bundleno = 5 (0x5), region = 86 }
 0x415   :  { %737 = vsyncpa [#allocation3], 1 }
 0x416   :  { %739 = vsyncpa [#allocation3 + $0x1], 1 }
 0x417   :  { %740 = vsyncpa [#allocation4], 1 }
 0x418   :  { %742 = vsyncpa [#allocation4 + $0x1], 1 }

</bundles_post_ra>
